<compile_context>
chip_gen: v7x
topology: tpu7x:2x2x1
jax: 0.10.0
libtpu: 0.0.40
codegen_flags: <defaults>
</compile_context>

<pallas_src>
import jax
import jax.numpy as jnp
from jax.experimental import pallas as pl
from jax.experimental.pallas import tpu as pltpu

# Small, TPU-friendly stand-ins for the production shape
# (num_ranks≈8, batch=4, seq=2048, dim=12288).  Benchmarks must be run at the
# production shape — at this toy size the kernel is launch-overhead bound.
NUM_RANKS = 2
BATCH = 2
SEQ_LEN = 8
DIM = 128          # multiple of 128 -> lane-dense, contiguous slabs
MICRO_ITER = 8     # idempotent repetition in the PyTorch module; not re-run here
DTYPE = jnp.float32  # spec dtype; use bf16 at production scale (DMA is dtype-agnostic)

# Cap on total concurrent DMA descriptors across all ranks.
_TARGET_INFLIGHT_DMAS = 8


def _largest_divisor_leq(n, cap):
    """Largest divisor of `n` that is <= cap (>= 1)."""
    for d in range(min(n, cap), 0, -1):
        if n % d == 0:
            return d
    return 1


def _make_allgather_kernel(num_ranks, num_splits, chunk):
    """Gather `num_ranks` HBM shards into the aliased output buffer via DMA.

    Each rank's shard is copied as `num_splits` contiguous sub-slabs of
    `chunk` batch rows; all (num_ranks * num_splits) DMAs are issued before
    any wait so the DMA engines overlap them.
    """

    def kernel(*refs):
        # refs = (x_0, ..., x_{R-1}, buffer_in, out, dma_sems)
        # All data refs live in HBM (memory_space=pl.ANY): direct HBM->HBM DMA,
        # no VMEM staging.  buffer_in is aliased to out and fully overwritten,
        # so it is never read.
        x_refs = refs[:num_ranks]
        out_ref = refs[num_ranks + 1]
        sems = refs[num_ranks + 2]

        copies = []
        for r in range(num_ranks):
            for s in range(num_splits):
                sl = pl.ds(s * chunk, chunk)          # static start/size
                copies.append(
                    pltpu.make_async_copy(
                        x_refs[r].at[sl],             # [chunk, S, D] slab of shard r
                        out_ref.at[r].at[sl],         # [chunk, S, D] slab of buffer[r]
                        sems.at[r, s],
                    )
                )
        # Issue every sub-slab copy first so the DMA engines overlap them,
        # then wait for completion.
        for cp in copies:
            cp.start()
        for cp in copies:
            cp.wait()

    return kernel


def pure_nccl_allgather(x_list, buffer):
    """Emulates in-place `_all_gather_base(buffer, x[rank])` on a single device.

    Args:
      x_list: list (length num_ranks) of arrays [batch, seq_len, dim].
      buffer: array [num_ranks, batch, seq_len, dim]; overwritten in place
              (aliased to the output).
    Returns:
      the gathered buffer, with out[r] == x_list[r].
    """
    assert isinstance(x_list, list) and len(x_list) >= 1
    num_ranks = len(x_list)
    B, S, D = x_list[0].shape
    dtype = x_list[0].dtype
    # Hygiene: all shards and the buffer must agree on shape/dtype, otherwise
    # the DMA shape check fails at trace time with a confusing error.
    for i, x in enumerate(x_list):
        assert x.shape == (B, S, D), f"shard {i} shape {x.shape} != {(B, S, D)}"
        assert x.dtype == dtype, f"shard {i} dtype {x.dtype} != {dtype}"
    assert buffer.shape == (num_ranks, B, S, D), (
        f"buffer shape {buffer.shape} != {(num_ranks, B, S, D)}")
    assert buffer.dtype == dtype, f"buffer dtype {buffer.dtype} != {dtype}"

    # Split each shard copy along the batch axis so several DMAs per rank are
    # in flight when num_ranks is small; cap the total in-flight count.
    max_splits_per_rank = max(1, _TARGET_INFLIGHT_DMAS // num_ranks)
    num_splits = _largest_divisor_leq(B, max_splits_per_rank)
    chunk = B // num_splits

    return pl.pallas_call(
        _make_allgather_kernel(num_ranks, num_splits, chunk),
        out_shape=jax.ShapeDtypeStruct((num_ranks, B, S, D), dtype),
        in_specs=[pl.BlockSpec(memory_space=pl.ANY)] * (num_ranks + 1),
        out_specs=pl.BlockSpec(memory_space=pl.ANY),
        # Write the gather in place into the existing buffer allocation,
        # matching the PyTorch in-place _all_gather_base semantics.
        input_output_aliases={num_ranks: 0},
        scratch_shapes=[pltpu.SemaphoreType.DMA((num_ranks, num_splits))],
    )(*x_list, buffer)


if __name__ == "__main__":
    key = jax.random.PRNGKey(0)
    k_buf, *k_shards = jax.random.split(key, NUM_RANKS + 1)

    # Module parameter: self.buffer ~ randn(num_ranks, batch, seq, dim).
    # Fully overwritten by the all-gather; it is donated/aliased to the output.
    buffer_init = jax.random.normal(
        k_buf, (NUM_RANKS, BATCH, SEQ_LEN, DIM), dtype=DTYPE
    )
    buffer_shape = buffer_init.shape

    # Input: list of per-rank shards, as in the PyTorch forward.
    x_list = [
        jax.random.normal(k, (BATCH, SEQ_LEN, DIM), dtype=DTYPE)
        for k in k_shards
    ]

    gathered = pure_nccl_allgather(x_list, buffer_init)
    gathered = jax.block_until_ready(gathered)

    # Reference: all-gather of per-rank shards == stacking the shards.
    ref = jnp.stack(x_list, axis=0)
    assert gathered.shape == buffer_shape
    assert jnp.allclose(gathered, ref), "all-gather emulation mismatch"

    print("KERNEL_OK")
</pallas_src>

<mosaic_0001>
module attributes {stable_mosaic.version = 11 : i64} {
  func.func @kernel(%arg0: memref<2x8x128xf32, #tpu.memory_space<any>>, %arg1: memref<2x8x128xf32, #tpu.memory_space<any>>, %arg2: memref<2x2x8x128xf32, #tpu.memory_space<any>>, %arg3: memref<2x2x8x128xf32, #tpu.memory_space<any>>, %arg4: memref<2x2x!tpu.dma_semaphore, #tpu.memory_space<semaphore_mem>>) attributes {dimension_semantics = [], scalar_prefetch = 0 : i64, scratch_operands = 1 : i64, tpu.core_type = #tpu.core_type<tc>} {
    %c0_i32 = arith.constant 0 : i32
    %c0_i32_0 = arith.constant 0 : i32
    %c0_i32_1 = arith.constant 0 : i32
    %c0_i32_2 = arith.constant 0 : i32
    %c0_i32_3 = arith.constant 0 : i32
    %c0_i32_4 = arith.constant 0 : i32
    %0 = tpu.memref_slice %arg0[%c0_i32_2, %c0_i32_3, %c0_i32_4] : memref<2x8x128xf32, #tpu.memory_space<any>> -> memref<1x8x128xf32, #tpu.memory_space<any>>
    %c0_i32_5 = arith.constant 0 : i32
    %c0_i32_6 = arith.constant 0 : i32
    %c0_i32_7 = arith.constant 0 : i32
    %1 = tpu.memref_slice %arg3[%c0_i32, %c0_i32_5, %c0_i32_6, %c0_i32_7] : memref<2x2x8x128xf32, #tpu.memory_space<any>> -> memref<1x2x8x128xf32, #tpu.memory_space<any>>
    %2 = tpu.memref_squeeze %1 : memref<1x2x8x128xf32, #tpu.memory_space<any>> -> memref<2x8x128xf32, #tpu.memory_space<any>>
    %c0_i32_8 = arith.constant 0 : i32
    %c0_i32_9 = arith.constant 0 : i32
    %c0_i32_10 = arith.constant 0 : i32
    %3 = tpu.memref_slice %2[%c0_i32_8, %c0_i32_9, %c0_i32_10] : memref<2x8x128xf32, #tpu.memory_space<any>> -> memref<1x8x128xf32, #tpu.memory_space<any>>
    %4 = tpu.memref_slice %arg4[%c0_i32_0, %c0_i32_1] : memref<2x2x!tpu.dma_semaphore, #tpu.memory_space<semaphore_mem>> -> memref<1x1x!tpu.dma_semaphore, #tpu.memory_space<semaphore_mem>>
    %5 = tpu.memref_squeeze %4 : memref<1x1x!tpu.dma_semaphore, #tpu.memory_space<semaphore_mem>> -> memref<!tpu.dma_semaphore, #tpu.memory_space<semaphore_mem>>
    tpu.enqueue_dma source(%0 : memref<1x8x128xf32, #tpu.memory_space<any>>) target(%3 : memref<1x8x128xf32, #tpu.memory_space<any>>) target_semaphore(%5 : memref<!tpu.dma_semaphore, #tpu.memory_space<semaphore_mem>>)
    %c0_i32_11 = arith.constant 0 : i32
    %c0_i32_12 = arith.constant 0 : i32
    %c1_i32 = arith.constant 1 : i32
    %c1_i32_13 = arith.constant 1 : i32
    %c0_i32_14 = arith.constant 0 : i32
    %c0_i32_15 = arith.constant 0 : i32
    %6 = tpu.memref_slice %arg0[%c1_i32_13, %c0_i32_14, %c0_i32_15] : memref<2x8x128xf32, #tpu.memory_space<any>> -> memref<1x8x128xf32, #tpu.memory_space<any>>
    %c0_i32_16 = arith.constant 0 : i32
    %c0_i32_17 = arith.constant 0 : i32
    %c0_i32_18 = arith.constant 0 : i32
    %7 = tpu.memref_slice %arg3[%c0_i32_11, %c0_i32_16, %c0_i32_17, %c0_i32_18] : memref<2x2x8x128xf32, #tpu.memory_space<any>> -> memref<1x2x8x128xf32, #tpu.memory_space<any>>
    %8 = tpu.memref_squeeze %7 : memref<1x2x8x128xf32, #tpu.memory_space<any>> -> memref<2x8x128xf32, #tpu.memory_space<any>>
    %c1_i32_19 = arith.constant 1 : i32
    %c0_i32_20 = arith.constant 0 : i32
    %c0_i32_21 = arith.constant 0 : i32
    %9 = tpu.memref_slice %8[%c1_i32_19, %c0_i32_20, %c0_i32_21] : memref<2x8x128xf32, #tpu.memory_space<any>> -> memref<1x8x128xf32, #tpu.memory_space<any>>
    %10 = tpu.memref_slice %arg4[%c0_i32_12, %c1_i32] : memref<2x2x!tpu.dma_semaphore, #tpu.memory_space<semaphore_mem>> -> memref<1x1x!tpu.dma_semaphore, #tpu.memory_space<semaphore_mem>>
    %11 = tpu.memref_squeeze %10 : memref<1x1x!tpu.dma_semaphore, #tpu.memory_space<semaphore_mem>> -> memref<!tpu.dma_semaphore, #tpu.memory_space<semaphore_mem>>
    tpu.enqueue_dma source(%6 : memref<1x8x128xf32, #tpu.memory_space<any>>) target(%9 : memref<1x8x128xf32, #tpu.memory_space<any>>) target_semaphore(%11 : memref<!tpu.dma_semaphore, #tpu.memory_space<semaphore_mem>>)
    %c1_i32_22 = arith.constant 1 : i32
    %c1_i32_23 = arith.constant 1 : i32
    %c0_i32_24 = arith.constant 0 : i32
    %c0_i32_25 = arith.constant 0 : i32
    %c0_i32_26 = arith.constant 0 : i32
    %c0_i32_27 = arith.constant 0 : i32
    %12 = tpu.memref_slice %arg1[%c0_i32_25, %c0_i32_26, %c0_i32_27] : memref<2x8x128xf32, #tpu.memory_space<any>> -> memref<1x8x128xf32, #tpu.memory_space<any>>
    %c0_i32_28 = arith.constant 0 : i32
    %c0_i32_29 = arith.constant 0 : i32
    %c0_i32_30 = arith.constant 0 : i32
    %13 = tpu.memref_slice %arg3[%c1_i32_22, %c0_i32_28, %c0_i32_29, %c0_i32_30] : memref<2x2x8x128xf32, #tpu.memory_space<any>> -> memref<1x2x8x128xf32, #tpu.memory_space<any>>
    %14 = tpu.memref_squeeze %13 : memref<1x2x8x128xf32, #tpu.memory_space<any>> -> memref<2x8x128xf32, #tpu.memory_space<any>>
    %c0_i32_31 = arith.constant 0 : i32
    %c0_i32_32 = arith.constant 0 : i32
    %c0_i32_33 = arith.constant 0 : i32
    %15 = tpu.memref_slice %14[%c0_i32_31, %c0_i32_32, %c0_i32_33] : memref<2x8x128xf32, #tpu.memory_space<any>> -> memref<1x8x128xf32, #tpu.memory_space<any>>
    %16 = tpu.memref_slice %arg4[%c1_i32_23, %c0_i32_24] : memref<2x2x!tpu.dma_semaphore, #tpu.memory_space<semaphore_mem>> -> memref<1x1x!tpu.dma_semaphore, #tpu.memory_space<semaphore_mem>>
    %17 = tpu.memref_squeeze %16 : memref<1x1x!tpu.dma_semaphore, #tpu.memory_space<semaphore_mem>> -> memref<!tpu.dma_semaphore, #tpu.memory_space<semaphore_mem>>
    tpu.enqueue_dma source(%12 : memref<1x8x128xf32, #tpu.memory_space<any>>) target(%15 : memref<1x8x128xf32, #tpu.memory_space<any>>) target_semaphore(%17 : memref<!tpu.dma_semaphore, #tpu.memory_space<semaphore_mem>>)
    %c1_i32_34 = arith.constant 1 : i32
    %c1_i32_35 = arith.constant 1 : i32
    %c1_i32_36 = arith.constant 1 : i32
    %c1_i32_37 = arith.constant 1 : i32
    %c0_i32_38 = arith.constant 0 : i32
    %c0_i32_39 = arith.constant 0 : i32
    %18 = tpu.memref_slice %arg1[%c1_i32_37, %c0_i32_38, %c0_i32_39] : memref<2x8x128xf32, #tpu.memory_space<any>> -> memref<1x8x128xf32, #tpu.memory_space<any>>
    %c0_i32_40 = arith.constant 0 : i32
    %c0_i32_41 = arith.constant 0 : i32
    %c0_i32_42 = arith.constant 0 : i32
    %19 = tpu.memref_slice %arg3[%c1_i32_34, %c0_i32_40, %c0_i32_41, %c0_i32_42] : memref<2x2x8x128xf32, #tpu.memory_space<any>> -> memref<1x2x8x128xf32, #tpu.memory_space<any>>
    %20 = tpu.memref_squeeze %19 : memref<1x2x8x128xf32, #tpu.memory_space<any>> -> memref<2x8x128xf32, #tpu.memory_space<any>>
    %c1_i32_43 = arith.constant 1 : i32
    %c0_i32_44 = arith.constant 0 : i32
    %c0_i32_45 = arith.constant 0 : i32
    %21 = tpu.memref_slice %20[%c1_i32_43, %c0_i32_44, %c0_i32_45] : memref<2x8x128xf32, #tpu.memory_space<any>> -> memref<1x8x128xf32, #tpu.memory_space<any>>
    %22 = tpu.memref_slice %arg4[%c1_i32_35, %c1_i32_36] : memref<2x2x!tpu.dma_semaphore, #tpu.memory_space<semaphore_mem>> -> memref<1x1x!tpu.dma_semaphore, #tpu.memory_space<semaphore_mem>>
    %23 = tpu.memref_squeeze %22 : memref<1x1x!tpu.dma_semaphore, #tpu.memory_space<semaphore_mem>> -> memref<!tpu.dma_semaphore, #tpu.memory_space<semaphore_mem>>
    tpu.enqueue_dma source(%18 : memref<1x8x128xf32, #tpu.memory_space<any>>) target(%21 : memref<1x8x128xf32, #tpu.memory_space<any>>) target_semaphore(%23 : memref<!tpu.dma_semaphore, #tpu.memory_space<semaphore_mem>>)
    %c0_i32_46 = arith.constant 0 : i32
    %c0_i32_47 = arith.constant 0 : i32
    %c0_i32_48 = arith.constant 0 : i32
    %c0_i32_49 = arith.constant 0 : i32
    %c0_i32_50 = arith.constant 0 : i32
    %c0_i32_51 = arith.constant 0 : i32
    %24 = tpu.memref_slice %arg0[%c0_i32_49, %c0_i32_50, %c0_i32_51] : memref<2x8x128xf32, #tpu.memory_space<any>> -> memref<1x8x128xf32, #tpu.memory_space<any>>
    %c0_i32_52 = arith.constant 0 : i32
    %c0_i32_53 = arith.constant 0 : i32
    %c0_i32_54 = arith.constant 0 : i32
    %25 = tpu.memref_slice %arg3[%c0_i32_46, %c0_i32_52, %c0_i32_53, %c0_i32_54] : memref<2x2x8x128xf32, #tpu.memory_space<any>> -> memref<1x2x8x128xf32, #tpu.memory_space<any>>
    %26 = tpu.memref_squeeze %25 : memref<1x2x8x128xf32, #tpu.memory_space<any>> -> memref<2x8x128xf32, #tpu.memory_space<any>>
    %c0_i32_55 = arith.constant 0 : i32
    %c0_i32_56 = arith.constant 0 : i32
    %c0_i32_57 = arith.constant 0 : i32
    %27 = tpu.memref_slice %26[%c0_i32_55, %c0_i32_56, %c0_i32_57] : memref<2x8x128xf32, #tpu.memory_space<any>> -> memref<1x8x128xf32, #tpu.memory_space<any>>
    %28 = tpu.memref_slice %arg4[%c0_i32_47, %c0_i32_48] : memref<2x2x!tpu.dma_semaphore, #tpu.memory_space<semaphore_mem>> -> memref<1x1x!tpu.dma_semaphore, #tpu.memory_space<semaphore_mem>>
    %29 = tpu.memref_squeeze %28 : memref<1x1x!tpu.dma_semaphore, #tpu.memory_space<semaphore_mem>> -> memref<!tpu.dma_semaphore, #tpu.memory_space<semaphore_mem>>
    tpu.wait_dma2 semaphore(%29 : memref<!tpu.dma_semaphore, #tpu.memory_space<semaphore_mem>>) src(%24 : memref<1x8x128xf32, #tpu.memory_space<any>>) dst(%27 : memref<1x8x128xf32, #tpu.memory_space<any>>)
    %c0_i32_58 = arith.constant 0 : i32
    %c0_i32_59 = arith.constant 0 : i32
    %c1_i32_60 = arith.constant 1 : i32
    %c1_i32_61 = arith.constant 1 : i32
    %c0_i32_62 = arith.constant 0 : i32
    %c0_i32_63 = arith.constant 0 : i32
    %30 = tpu.memref_slice %arg0[%c1_i32_61, %c0_i32_62, %c0_i32_63] : memref<2x8x128xf32, #tpu.memory_space<any>> -> memref<1x8x128xf32, #tpu.memory_space<any>>
    %c0_i32_64 = arith.constant 0 : i32
    %c0_i32_65 = arith.constant 0 : i32
    %c0_i32_66 = arith.constant 0 : i32
    %31 = tpu.memref_slice %arg3[%c0_i32_58, %c0_i32_64, %c0_i32_65, %c0_i32_66] : memref<2x2x8x128xf32, #tpu.memory_space<any>> -> memref<1x2x8x128xf32, #tpu.memory_space<any>>
    %32 = tpu.memref_squeeze %31 : memref<1x2x8x128xf32, #tpu.memory_space<any>> -> memref<2x8x128xf32, #tpu.memory_space<any>>
    %c1_i32_67 = arith.constant 1 : i32
    %c0_i32_68 = arith.constant 0 : i32
    %c0_i32_69 = arith.constant 0 : i32
    %33 = tpu.memref_slice %32[%c1_i32_67, %c0_i32_68, %c0_i32_69] : memref<2x8x128xf32, #tpu.memory_space<any>> -> memref<1x8x128xf32, #tpu.memory_space<any>>
    %34 = tpu.memref_slice %arg4[%c0_i32_59, %c1_i32_60] : memref<2x2x!tpu.dma_semaphore, #tpu.memory_space<semaphore_mem>> -> memref<1x1x!tpu.dma_semaphore, #tpu.memory_space<semaphore_mem>>
    %35 = tpu.memref_squeeze %34 : memref<1x1x!tpu.dma_semaphore, #tpu.memory_space<semaphore_mem>> -> memref<!tpu.dma_semaphore, #tpu.memory_space<semaphore_mem>>
    tpu.wait_dma2 semaphore(%35 : memref<!tpu.dma_semaphore, #tpu.memory_space<semaphore_mem>>) src(%30 : memref<1x8x128xf32, #tpu.memory_space<any>>) dst(%33 : memref<1x8x128xf32, #tpu.memory_space<any>>)
    %c1_i32_70 = arith.constant 1 : i32
    %c1_i32_71 = arith.constant 1 : i32
    %c0_i32_72 = arith.constant 0 : i32
    %c0_i32_73 = arith.constant 0 : i32
    %c0_i32_74 = arith.constant 0 : i32
    %c0_i32_75 = arith.constant 0 : i32
    %36 = tpu.memref_slice %arg1[%c0_i32_73, %c0_i32_74, %c0_i32_75] : memref<2x8x128xf32, #tpu.memory_space<any>> -> memref<1x8x128xf32, #tpu.memory_space<any>>
    %c0_i32_76 = arith.constant 0 : i32
    %c0_i32_77 = arith.constant 0 : i32
    %c0_i32_78 = arith.constant 0 : i32
    %37 = tpu.memref_slice %arg3[%c1_i32_70, %c0_i32_76, %c0_i32_77, %c0_i32_78] : memref<2x2x8x128xf32, #tpu.memory_space<any>> -> memref<1x2x8x128xf32, #tpu.memory_space<any>>
    %38 = tpu.memref_squeeze %37 : memref<1x2x8x128xf32, #tpu.memory_space<any>> -> memref<2x8x128xf32, #tpu.memory_space<any>>
    %c0_i32_79 = arith.constant 0 : i32
    %c0_i32_80 = arith.constant 0 : i32
    %c0_i32_81 = arith.constant 0 : i32
    %39 = tpu.memref_slice %38[%c0_i32_79, %c0_i32_80, %c0_i32_81] : memref<2x8x128xf32, #tpu.memory_space<any>> -> memref<1x8x128xf32, #tpu.memory_space<any>>
    %40 = tpu.memref_slice %arg4[%c1_i32_71, %c0_i32_72] : memref<2x2x!tpu.dma_semaphore, #tpu.memory_space<semaphore_mem>> -> memref<1x1x!tpu.dma_semaphore, #tpu.memory_space<semaphore_mem>>
    %41 = tpu.memref_squeeze %40 : memref<1x1x!tpu.dma_semaphore, #tpu.memory_space<semaphore_mem>> -> memref<!tpu.dma_semaphore, #tpu.memory_space<semaphore_mem>>
    tpu.wait_dma2 semaphore(%41 : memref<!tpu.dma_semaphore, #tpu.memory_space<semaphore_mem>>) src(%36 : memref<1x8x128xf32, #tpu.memory_space<any>>) dst(%39 : memref<1x8x128xf32, #tpu.memory_space<any>>)
    %c1_i32_82 = arith.constant 1 : i32
    %c1_i32_83 = arith.constant 1 : i32
    %c1_i32_84 = arith.constant 1 : i32
    %c1_i32_85 = arith.constant 1 : i32
    %c0_i32_86 = arith.constant 0 : i32
    %c0_i32_87 = arith.constant 0 : i32
    %42 = tpu.memref_slice %arg1[%c1_i32_85, %c0_i32_86, %c0_i32_87] : memref<2x8x128xf32, #tpu.memory_space<any>> -> memref<1x8x128xf32, #tpu.memory_space<any>>
    %c0_i32_88 = arith.constant 0 : i32
    %c0_i32_89 = arith.constant 0 : i32
    %c0_i32_90 = arith.constant 0 : i32
    %43 = tpu.memref_slice %arg3[%c1_i32_82, %c0_i32_88, %c0_i32_89, %c0_i32_90] : memref<2x2x8x128xf32, #tpu.memory_space<any>> -> memref<1x2x8x128xf32, #tpu.memory_space<any>>
    %44 = tpu.memref_squeeze %43 : memref<1x2x8x128xf32, #tpu.memory_space<any>> -> memref<2x8x128xf32, #tpu.memory_space<any>>
    %c1_i32_91 = arith.constant 1 : i32
    %c0_i32_92 = arith.constant 0 : i32
    %c0_i32_93 = arith.constant 0 : i32
    %45 = tpu.memref_slice %44[%c1_i32_91, %c0_i32_92, %c0_i32_93] : memref<2x8x128xf32, #tpu.memory_space<any>> -> memref<1x8x128xf32, #tpu.memory_space<any>>
    %46 = tpu.memref_slice %arg4[%c1_i32_83, %c1_i32_84] : memref<2x2x!tpu.dma_semaphore, #tpu.memory_space<semaphore_mem>> -> memref<1x1x!tpu.dma_semaphore, #tpu.memory_space<semaphore_mem>>
    %47 = tpu.memref_squeeze %46 : memref<1x1x!tpu.dma_semaphore, #tpu.memory_space<semaphore_mem>> -> memref<!tpu.dma_semaphore, #tpu.memory_space<semaphore_mem>>
    tpu.wait_dma2 semaphore(%47 : memref<!tpu.dma_semaphore, #tpu.memory_space<semaphore_mem>>) src(%42 : memref<1x8x128xf32, #tpu.memory_space<any>>) dst(%45 : memref<1x8x128xf32, #tpu.memory_space<any>>)
    return
  }
}

</mosaic_0001>

<bundles_post_ra>
// kernel: tpu_custom_call.1
= control target key start
LH: loop header
LB: loop body
LE: loop exit
PB: predicated region body
PF: predicated region fallthrough
CT: control target
= control target key end

     0   :  { %s305_s0 = inlined_call_operand.vmem [shape: f32[2,8,128], index: 0, kind: input, shape index: {}]   ;;  %s306_s2 = inlined_call_operand.hbm [shape: f32[2,2,8,128], index: 2, kind: input, shape index: {}, may-alias: {2,3}]   ;;  %s307_s3 = inlined_call_operand.hbm [shape: f32[2,2,8,128], index: 3, kind: output, shape index: {}, may-alias: {2,3}]   ;;  %s308_s1 = inlined_call_operand.vmem [shape: f32[2,8,128], index: 1, kind: input, shape index: {}]  }
   0x1   :  { %s15_s14 = sshll.u32 %s305_s0, 4  ;;  %s19_s17 = scalar_lea.vmem %s305_s0, 8  ;;  %s16_s14 = int_to_ptr.vmem [resolvable:$true] %s15_s14 }
   0x2   :  { %s236_s20 = scalar_lea.hbm %s307_s3, 128  ;;  %s102_s2 = scalar_lea.vmem %s16_s14, 128 }
   0x3   :  { %p103_p0 = scmp.ne.s32.totalorder %s16_s14, %s102_s2  ;;  %s106_s21 = scalar_lea.vmem %s16_s14, 256 }
   0x4   :  { %p107_p1 = scmp.lt.s32.totalorder %s16_s14, %s16_s14  ;;  %p108_p2 = scmp.lt.s32.totalorder %s106_s21, %s102_s2 }
   0x6   :  { %p109_p3 = por %p108_p2, %p107_p1 }
   0x8   :  { %p110_p4 = pnand %p109_p3, %p103_p0 }
   0xa   :  { %113 = shalt.err (!%p110_p4)  }
   0xb   :  { %p115_p5 = scmp.ne.s32.totalorder %s307_s3, %s236_s20  ;;  %s245_s25 = scalar_lea.hbm %s307_s3, 512 }
   0xc   :  { %p117_p6 = scmp.lt.u32.totalorder %s245_s25, %s236_s20  ;;  %p118_p7 = scmp.lt.u32.totalorder %s236_s20, %s307_s3 }
   0xe   :  { %p119_p8 = por %p118_p7, %p117_p6 }
  0x10   :  { %p120_p9 = pnand %p119_p8, %p115_p5 }
  0x12   :  { %123 = shalt.err (!%p120_p9)  }
  0x13   :  { %18 = dma.vmem_to_hbm [thread:$0]  %s16_s14, 128, %s307_s3, [#allocation2] }
  0x14   :  { %s29_s5 = sshll.u32 %s19_s17, 4  ;;  %s264_s8 = scalar_lea.hbm %s307_s3, 256  ;;  %s30_s5 = int_to_ptr.vmem [resolvable:$true] %s29_s5 }
  0x15   :  { %s42_s11 = sshll.u32 %s308_s1, 4  ;;  %s124_s12 = scalar_lea.vmem %s30_s5, 128  ;;  %s43_s11 = int_to_ptr.vmem [resolvable:$true] %s42_s11 }
  0x16   :  { %p125_p10 = scmp.ne.s32.totalorder %s30_s5, %s124_s12  ;;  %p129_p11 = scmp.lt.s32.totalorder %s30_s5, %s16_s14 }
  0x17   :  { %p130_p12 = scmp.lt.s32.totalorder %s106_s21, %s124_s12 }
  0x19   :  { %p131_p13 = por %p130_p12, %p129_p11 }
  0x1b   :  { %p132_p0 = pnand %p131_p13, %p125_p10 }
  0x1d   :  { %135 = shalt.err (!%p132_p0)  }
  0x1e   :  { %p137_p1 = scmp.ne.s32.totalorder %s236_s20, %s264_s8  ;;  %p140_p2 = scmp.lt.u32.totalorder %s245_s25, %s264_s8 }
  0x1f   :  { %p142_p4 = scmp.lt.u32.totalorder %s264_s8, %s236_s20 }
  0x20   :  { %p141_p3 = por %p140_p2, %p118_p7 }
  0x22   :  { %p143_p5 = por %p142_p4, %p141_p3 }
  0x24   :  { %p144_p6 = pnand %p143_p5, %p137_p1 }
  0x26   :  { %147 = shalt.err (!%p144_p6)  }
  0x27   :  { %32 = dma.vmem_to_hbm [thread:$0]  %s30_s5, 128, %s236_s20, [#allocation2 + $0x1] }
  0x28   :  { %s46_s17 = scalar_lea.vmem %s308_s1, 8  ;;  %s149_s18 = scalar_lea.vmem %s43_s11, 128 }
  0x29   :  { %p150_p8 = scmp.ne.s32.totalorder %s43_s11, %s149_s18  ;;  %s153_s19 = scalar_lea.vmem %s43_s11, 256 }
  0x2a   :  { %p154_p9 = scmp.lt.s32.totalorder %s43_s11, %s43_s11  ;;  %p155_p10 = scmp.lt.s32.totalorder %s153_s19, %s149_s18 }
  0x2c   :  { %p156_p11 = por %p155_p10, %p154_p9 }
  0x2e   :  { %p157_p12 = pnand %p156_p11, %p150_p8 }
  0x30   :  { %160 = shalt.err (!%p157_p12)  }
  0x31   :  { %s173_s20 = scalar_lea.hbm %s307_s3, 384  ;;  %p164_p13 = scmp.lt.u32.totalorder %s264_s8, %s307_s3 }
  0x32   :  { %p162_p7 = scmp.ne.s32.totalorder %s264_s8, %s173_s20  ;;  %p165_p0 = scmp.lt.u32.totalorder %s245_s25, %s173_s20 }
  0x33   :  { %p167_p2 = scmp.lt.u32.totalorder %s173_s20, %s264_s8 }
  0x34   :  { %p166_p1 = por %p165_p0, %p164_p13 }
  0x36   :  { %p168_p3 = por %p167_p2, %p166_p1 }
  0x38   :  { %p169_p4 = pnand %p168_p3, %p162_p7 }
  0x3a   :  { %172 = shalt.err (!%p169_p4)  }
  0x3b   :  { %45 = dma.vmem_to_hbm [thread:$0]  %s43_s11, 128, %s264_s8, [#allocation2 + $0x2] }
  0x3c   :  { %s56_s23 = sshll.u32 %s46_s17, 4  ;;  %s57_s23 = int_to_ptr.vmem [resolvable:$true] %s56_s23 }
  0x3d   :  { %s174_s0 = scalar_lea.vmem %s57_s23, 128  ;;  %p179_p6 = scmp.lt.s32.totalorder %s57_s23, %s43_s11 }
  0x3e   :  { %p175_p5 = scmp.ne.s32.totalorder %s57_s23, %s174_s0  ;;  %p180_p8 = scmp.lt.s32.totalorder %s153_s19, %s174_s0 }
  0x40   :  { %p181_p9 = por %p180_p8, %p179_p6 }
  0x42   :  { %p182_p10 = pnand %p181_p9, %p175_p5 }
  0x44   :  { %185 = shalt.err (!%p182_p10)  }
  0x45   :  { %p187_p11 = scmp.ne.s32.totalorder %s173_s20, %s245_s25  ;;  %p189_p12 = scmp.lt.u32.totalorder %s173_s20, %s307_s3 }
  0x46   :  { %p190_p7 = scmp.lt.u32.totalorder %s245_s25, %s245_s25 }
  0x48   :  { %p191_p13 = por %p190_p7, %p189_p12 }
  0x4a   :  { %p193_p1 = por %p191_p13, %p165_p0 }
  0x4c   :  { %p194_p2 = pnand %p193_p1, %p187_p11 }
  0x4e   :  { %197 = shalt.err (!%p194_p2)  }
  0x4f   :  { %59 = dma.vmem_to_hbm [thread:$0]  %s57_s23, 128, %s173_s20, [#allocation2 + $0x3] }
  0x50   :  { %199 = dma.done.wait [#allocation2], 128 }
  0x51   :  { %200 = vsyncadd [#allocation2], 4294967168 }
  0x52   :  { %201 = dma.done.wait [#allocation2 + $0x1], 128 }
  0x53   :  { %202 = vsyncadd [#allocation2 + $0x1], 4294967168 }
  0x54   :  { %203 = dma.done.wait [#allocation2 + $0x2], 128 }
  0x55   :  { %204 = vsyncadd [#allocation2 + $0x2], 4294967168 }
  0x56   :  { %205 = dma.done.wait [#allocation2 + $0x3], 128 }
  0x57   :  { %206 = vsyncadd [#allocation2 + $0x3], 4294967168 }
  0x58   :  { %70 = vsyncmov [#allocation2] }
  0x5b   :  { %s71_s27 = vpop.sfrf %70 }
  0x5c   :  { %p98_p3 = scmp.ne.s32.totalorder %s71_s27, 0 }
  0x5e   :  { %75 = shalt.err (%p98_p3)  }
  0x5f   :  { %77 = vsyncmov [#allocation2 + $0x1] }
  0x62   :  { %s78_s3 = vpop.sfrf %77 }
  0x63   :  { %p99_p4 = scmp.ne.s32.totalorder %s78_s3, 0 }
  0x65   :  { %82 = shalt.err (%p99_p4)  }
  0x66   :  { %84 = vsyncmov [#allocation2 + $0x2] }
  0x69   :  { %s85_s25 = vpop.sfrf %84 }
  0x6a   :  { %p100_p0 = scmp.ne.s32.totalorder %s85_s25, 0 }
  0x6c   :  { %89 = shalt.err (%p100_p0)  }
  0x6d   :  { %91 = vsyncmov [#allocation2 + $0x3] }
  0x70   :  { %s92_s28 = vpop.sfrf %91 }
  0x71   :  { %p101_p5 = scmp.ne.s32.totalorder %s92_s28, 0 }
  0x73   :  { %96 = shalt.err (%p101_p5)  }

</bundles_post_ra>
